<compile_context>
chip_gen: v6e
topology: v6e:2x2x1
jax: 0.10.0
libtpu: 0.0.40
codegen_flags: <defaults>
</compile_context>

<pallas_src>
import functools

import jax
import jax.numpy as jnp
from jax.experimental import pallas as pl
from jax.experimental.pallas import tpu as pltpu


def _balance_loss_kernel(x1_ref, x2_ref, out_ref, acc_ref, *, class_num, inv_total):
    """x refs: (C, Tr, Tw) blocks; out_ref: (1, 1); acc_ref: (Tr, Tw) f32 VMEM."""
    s = pl.program_id(1)  # reduction step within this partial stream

    @pl.when(s == 0)
    def _init():
        acc_ref[...] = jnp.zeros_like(acc_ref)

    def tile_neg_log(x):
        x = x.astype(jnp.float32)                     # upcast in-kernel
        m = jnp.max(x, axis=0, keepdims=True)         # stable softmax over C
        e = jnp.exp(x - m)                            # (C, Tr, Tw)
        s_cn = jnp.sum(e[:class_num], axis=0)         # (Tr, Tw)
        if class_num < x.shape[0]:
            s_all = s_cn + jnp.sum(e[class_num:], axis=0)   # fused channel sums
        else:
            s_all = s_cn
        # mean prob over first class_num channels == s_cn / (class_num * s_all)
        pbar = s_cn / (class_num * s_all)
        return -jnp.log(pbar + 1e-6)                  # (Tr, Tw)

    # Elementwise accumulate; no per-step cross-lane reduce.
    acc_ref[...] += tile_neg_log(x1_ref[...]) + tile_neg_log(x2_ref[...])

    @pl.when(s == pl.num_programs(1) - 1)
    def _finalize():
        out_ref[...] = jnp.reshape(jnp.sum(acc_ref[...]), (1, 1)) * inv_total


def _pick_tile_rows(R, lane_w, C, max_block_f32_bytes):
    """Largest row-tile that divides R, is a multiple of 8 (or == R), and keeps
    the f32-equivalent block under max_block_f32_bytes."""
    cands = [tr for tr in range(8, R + 1, 8) if R % tr == 0]
    if not cands:
        return R
    fitting = [tr for tr in cands if C * tr * lane_w * 4 <= max_block_f32_bytes]
    return max(fitting) if fitting else min(cands)


def _default_num_partials():
    """2 partial streams only on v7x (2 TensorCores/chip); 1 on v5e/v6e."""
    try:
        kind = jax.devices()[0].device_kind.lower()
    except Exception:
        return 1
    return 2 if "7" in kind else 1


def balance_loss_2d(inputs1, inputs2, class_num, *, tile_rows=None,
                    num_partials=None, max_block_f32_bytes=4 << 20):
    """inputs1, inputs2: (N, C, H, W) logits (any float dtype).  class_num: static int."""
    N, C, H, W = inputs1.shape
    assert inputs2.shape == inputs1.shape
    class_num = int(class_num)
    assert 1 <= class_num <= C

    HW = H * W
    itemsize = jnp.dtype(inputs1.dtype).itemsize

    # Lane-dense spatial layout: flatten (H, W) -> (HW/128, 128) when possible
    # (free, contiguous reshape); otherwise keep (H, W) and take full blocks.
    if HW % 128 == 0:
        lane_w = 128
        R = HW // 128
        x1 = inputs1.reshape(N, C, R, lane_w)
        x2 = inputs2.reshape(N, C, R, lane_w)
    else:
        lane_w = W
        R = H
        x1, x2 = inputs1, inputs2

    if tile_rows is None:
        tile_rows = _pick_tile_rows(R, lane_w, C, max_block_f32_bytes)
    assert R % tile_rows == 0 and (tile_rows % 8 == 0 or tile_rows == R)
    n_tiles = R // tile_rows

    if num_partials is None:
        num_partials = _default_num_partials()
    if n_tiles < num_partials or n_tiles % num_partials != 0:
        num_partials = 1
    n_steps = n_tiles // num_partials

    kernel = functools.partial(
        _balance_loss_kernel, class_num=class_num, inv_total=1.0 / float(HW))

    # Explicit scoped-VMEM budget: 2 inputs x 2 pipeline buffers x block, plus
    # ~3 f32 blocks of in-kernel intermediates, the accumulator, and margin.
    block_bytes = C * tile_rows * lane_w * itemsize
    f32_block_bytes = C * tile_rows * lane_w * 4
    acc_bytes = tile_rows * lane_w * 4
    vmem_limit = int(min(2 * 2 * block_bytes + 3 * f32_block_bytes + acc_bytes
                         + (8 << 20), 56 << 20))

    cost = pl.CostEstimate(
        flops=int(2 * (3 * C + 8) * HW),
        transcendentals=int(2 * (C + 2) * HW),       # exp per channel + log + rcp
        bytes_accessed=int(2 * C * HW * itemsize + num_partials * 4),
    )

    # Batch 0 and the spatial tile are selected here; no host-side slice/cast.
    in_spec = pl.BlockSpec(
        (pl.Squeezed(), C, tile_rows, lane_w),
        lambda p, s: (0, 0, p * n_steps + s, 0),
    )
    out = pl.pallas_call(
        kernel,
        out_shape=jax.ShapeDtypeStruct((num_partials, 1, 1), jnp.float32),
        grid_spec=pltpu.PrefetchScalarGridSpec(
            num_scalar_prefetch=0,
            grid=(num_partials, n_steps),
            in_specs=[in_spec, in_spec],
            out_specs=pl.BlockSpec((pl.Squeezed(), 1, 1), lambda p, s: (p, 0, 0)),
            scratch_shapes=[pltpu.VMEM((tile_rows, lane_w), jnp.float32)],
        ),
        compiler_params=pltpu.CompilerParams(
            dimension_semantics=("parallel", "arbitrary"),
            vmem_limit_bytes=vmem_limit,
        ),
        cost_estimate=cost,
    )(x1, x2)
    # Each partial is already scaled by 1/(H*W); summing gives the full loss.
    return jnp.sum(out)


def _reference(inputs1, inputs2, class_num):
    # Pure-JAX reference mirroring the PyTorch forward (the print() calls are
    # debug side-effects only and do not affect the returned value).
    p1 = jax.nn.softmax(inputs1.astype(jnp.float32), axis=1)[0, :class_num]
    p2 = jax.nn.softmax(inputs2.astype(jnp.float32), axis=1)[0, :class_num]
    p1 = jnp.mean(p1, axis=0)
    p2 = jnp.mean(p2, axis=0)
    return -jnp.mean(jnp.log(p1 + 1e-6)) - jnp.mean(jnp.log(p2 + 1e-6))


if __name__ == "__main__":
    key = jax.random.PRNGKey(0)
    k1, k2 = jax.random.split(key)
    N, C, H, W = 2, 4, 64, 32   # HW = 2048 -> lane-dense (16, 128) spatial slab
    class_num = 3

    inputs1 = jax.random.normal(k1, (N, C, H, W), dtype=jnp.float32)
    inputs2 = jax.random.normal(k2, (N, C, H, W), dtype=jnp.float32)

    # tile_rows=8 -> 2 row-tiles of the flattened spatial slab, exercising the
    # gridded accumulation; num_partials is picked per-device (2 only on v7x).
    loss = balance_loss_2d(inputs1, inputs2, class_num, tile_rows=8)
    loss = jax.block_until_ready(loss)

    ref = _reference(inputs1, inputs2, class_num)
    assert jnp.allclose(loss, ref, rtol=1e-5, atol=1e-5), (loss, ref)

    print("KERNEL_OK")
</pallas_src>

<mosaic_0001>
module attributes {stable_mosaic.version = 11 : i64} {
  func.func @_balance_loss_kernel(%arg0: i32, %arg1: i32, %arg2: memref<1x4x8x128xf32, #tpu.memory_space<vmem>>, %arg3: memref<1x4x8x128xf32, #tpu.memory_space<vmem>>, %arg4: memref<1x1x1xf32, #tpu.memory_space<vmem>>, %arg5: memref<8x128xf32, #tpu.memory_space<vmem>>) attributes {dimension_semantics = [#tpu.dimension_semantics<parallel>, #tpu.dimension_semantics<arbitrary>], iteration_bounds = array<i64: 1, 2>, scalar_prefetch = 0 : i64, scratch_operands = 1 : i64, tpu.core_type = #tpu.core_type<tc>, window_params = [{transform_indices = @transform_0, window_bounds = array<i64: 1, 4, 8, 128>}, {transform_indices = @transform_1, window_bounds = array<i64: 1, 4, 8, 128>}, {transform_indices = @transform_2, window_bounds = array<i64: 1, 1, 1>}]} {
    %c0_i32 = arith.constant 0 : i32
    %0 = arith.cmpi eq, %arg1, %c0_i32 : i32
    %1 = arith.extui %0 : i1 to i32
    %c0_i32_0 = arith.constant 0 : i32
    %2 = arith.cmpi ne, %1, %c0_i32_0 : i32
    scf.if %2 {
      %cst_24 = arith.constant 0.000000e+00 : f32
      %50 = vector.broadcast %cst_24 : f32 to vector<8x128xf32>
      %c0_25 = arith.constant 0 : index
      %c0_26 = arith.constant 0 : index
      %51 = vector.load %arg5[%c0_25, %c0_26] : memref<8x128xf32, #tpu.memory_space<vmem>>, vector<8x128xf32>
      tpu.vector_store %arg5[%c0_25, %c0_26], %50 {strides = array<i32>} : memref<8x128xf32, #tpu.memory_space<vmem>>, vector<8x128xf32>,
    } else {
    }
    %c0 = arith.constant 0 : index
    %c0_1 = arith.constant 0 : index
    %3 = vector.load %arg5[%c0, %c0_1] : memref<8x128xf32, #tpu.memory_space<vmem>>, vector<8x128xf32>
    %c0_2 = arith.constant 0 : index
    %c0_3 = arith.constant 0 : index
    %c0_4 = arith.constant 0 : index
    %c0_5 = arith.constant 0 : index
    %4 = vector.load %arg2[%c0_2, %c0_3, %c0_4, %c0_5] : memref<1x4x8x128xf32, #tpu.memory_space<vmem>>, vector<1x4x8x128xf32>
    %5 = vector.shape_cast %4 : vector<1x4x8x128xf32> to vector<4x8x128xf32>
    %cst = arith.constant dense<0xFF800000> : vector<8x128xf32>
    %6 = vector.multi_reduction <maximumf>, %5, %cst [0] : vector<4x8x128xf32> to vector<8x128xf32>
    %7 = vector.shape_cast %6 : vector<8x128xf32> to vector<1x8x128xf32>
    %8 = vector.broadcast %7 : vector<1x8x128xf32> to vector<4x8x128xf32>
    %9 = arith.subf %5, %8 : vector<4x8x128xf32>
    %10 = math.exp %9 : vector<4x8x128xf32>
    %11 = vector.extract_strided_slice %10 {offsets = [0, 0, 0], sizes = [3, 8, 128], strides = [1, 1, 1]} : vector<4x8x128xf32> to vector<3x8x128xf32>
    %cst_6 = arith.constant dense<0.000000e+00> : vector<8x128xf32>
    %12 = vector.multi_reduction <add>, %11, %cst_6 [0] : vector<3x8x128xf32> to vector<8x128xf32>
    %13 = vector.extract_strided_slice %10 {offsets = [3, 0, 0], sizes = [1, 8, 128], strides = [1, 1, 1]} : vector<4x8x128xf32> to vector<1x8x128xf32>
    %cst_7 = arith.constant dense<0.000000e+00> : vector<8x128xf32>
    %14 = vector.multi_reduction <add>, %13, %cst_7 [0] : vector<1x8x128xf32> to vector<8x128xf32>
    %15 = arith.addf %12, %14 : vector<8x128xf32>
    %cst_8 = arith.constant 3.000000e+00 : f32
    %16 = vector.broadcast %cst_8 : f32 to vector<8x128xf32>
    %17 = arith.mulf %16, %15 : vector<8x128xf32>
    %18 = arith.divf %12, %17 : vector<8x128xf32>
    %cst_9 = arith.constant 9.99999997E-7 : f32
    %19 = vector.broadcast %cst_9 : f32 to vector<8x128xf32>
    %20 = arith.addf %18, %19 : vector<8x128xf32>
    %21 = math.log %20 : vector<8x128xf32>
    %cst_10 = arith.constant 0.000000e+00 : f32
    %22 = vector.broadcast %cst_10 : f32 to vector<8x128xf32>
    %23 = arith.subf %22, %21 : vector<8x128xf32>
    %c0_11 = arith.constant 0 : index
    %c0_12 = arith.constant 0 : index
    %c0_13 = arith.constant 0 : index
    %c0_14 = arith.constant 0 : index
    %24 = vector.load %arg3[%c0_11, %c0_12, %c0_13, %c0_14] : memref<1x4x8x128xf32, #tpu.memory_space<vmem>>, vector<1x4x8x128xf32>
    %25 = vector.shape_cast %24 : vector<1x4x8x128xf32> to vector<4x8x128xf32>
    %cst_15 = arith.constant dense<0xFF800000> : vector<8x128xf32>
    %26 = vector.multi_reduction <maximumf>, %25, %cst_15 [0] : vector<4x8x128xf32> to vector<8x128xf32>
    %27 = vector.shape_cast %26 : vector<8x128xf32> to vector<1x8x128xf32>
    %28 = vector.broadcast %27 : vector<1x8x128xf32> to vector<4x8x128xf32>
    %29 = arith.subf %25, %28 : vector<4x8x128xf32>
    %30 = math.exp %29 : vector<4x8x128xf32>
    %31 = vector.extract_strided_slice %30 {offsets = [0, 0, 0], sizes = [3, 8, 128], strides = [1, 1, 1]} : vector<4x8x128xf32> to vector<3x8x128xf32>
    %cst_16 = arith.constant dense<0.000000e+00> : vector<8x128xf32>
    %32 = vector.multi_reduction <add>, %31, %cst_16 [0] : vector<3x8x128xf32> to vector<8x128xf32>
    %33 = vector.extract_strided_slice %30 {offsets = [3, 0, 0], sizes = [1, 8, 128], strides = [1, 1, 1]} : vector<4x8x128xf32> to vector<1x8x128xf32>
    %cst_17 = arith.constant dense<0.000000e+00> : vector<8x128xf32>
    %34 = vector.multi_reduction <add>, %33, %cst_17 [0] : vector<1x8x128xf32> to vector<8x128xf32>
    %35 = arith.addf %32, %34 : vector<8x128xf32>
    %cst_18 = arith.constant 3.000000e+00 : f32
    %36 = vector.broadcast %cst_18 : f32 to vector<8x128xf32>
    %37 = arith.mulf %36, %35 : vector<8x128xf32>
    %38 = arith.divf %32, %37 : vector<8x128xf32>
    %cst_19 = arith.constant 9.99999997E-7 : f32
    %39 = vector.broadcast %cst_19 : f32 to vector<8x128xf32>
    %40 = arith.addf %38, %39 : vector<8x128xf32>
    %41 = math.log %40 : vector<8x128xf32>
    %cst_20 = arith.constant 0.000000e+00 : f32
    %42 = vector.broadcast %cst_20 : f32 to vector<8x128xf32>
    %43 = arith.subf %42, %41 : vector<8x128xf32>
    %44 = arith.addf %23, %43 : vector<8x128xf32>
    %45 = arith.addf %3, %44 : vector<8x128xf32>
    %c0_21 = arith.constant 0 : index
    %c0_22 = arith.constant 0 : index
    %46 = vector.load %arg5[%c0_21, %c0_22] : memref<8x128xf32, #tpu.memory_space<vmem>>, vector<8x128xf32>
    tpu.vector_store %arg5[%c0_21, %c0_22], %45 {strides = array<i32>} : memref<8x128xf32, #tpu.memory_space<vmem>>, vector<8x128xf32>,
    %c1_i32 = arith.constant 1 : i32
    %47 = arith.cmpi eq, %arg1, %c1_i32 : i32
    %48 = arith.extui %47 : i1 to i32
    %c0_i32_23 = arith.constant 0 : i32
    %49 = arith.cmpi ne, %48, %c0_i32_23 : i32
    scf.if %49 {
      %c0_24 = arith.constant 0 : index
      %c0_25 = arith.constant 0 : index
      %50 = vector.load %arg5[%c0_24, %c0_25] : memref<8x128xf32, #tpu.memory_space<vmem>>, vector<8x128xf32>
      %51 = vector.shape_cast %50 : vector<8x128xf32> to vector<1x8x128xf32>
      %cst_26 = arith.constant dense<0.000000e+00> : vector<1xf32>
      %52 = vector.multi_reduction <add>, %51, %cst_26 [1, 2] : vector<1x8x128xf32> to vector<1xf32>
      %53 = vector.shape_cast %52 : vector<1xf32> to vector<1x1x1xf32>
      %54 = vector.extract %53[0, 0, 0] : f32 from vector<1x1x1xf32>
      %55 = vector.broadcast %54 : f32 to vector<1x1xf32>
      %cst_27 = arith.constant 4.8828125E-4 : f32
      %56 = vector.broadcast %cst_27 : f32 to vector<1x1xf32>
      %57 = arith.mulf %55, %56 : vector<1x1xf32>
      %c0_28 = arith.constant 0 : index
      %c0_29 = arith.constant 0 : index
      %c0_30 = arith.constant 0 : index
      %58 = vector.load %arg4[%c0_28, %c0_29, %c0_30] : memref<1x1x1xf32, #tpu.memory_space<vmem>>, vector<1x1x1xf32>
      %59 = vector.shape_cast %58 : vector<1x1x1xf32> to vector<1x1xf32>
      %60 = vector.shape_cast %57 : vector<1x1xf32> to vector<1x1x1xf32>
      tpu.vector_store %arg4[%c0_28, %c0_29, %c0_30], %60 {strides = array<i32>} : memref<1x1x1xf32, #tpu.memory_space<vmem>>, vector<1x1x1xf32>,
    } else {
    }
    return
  }
  func.func @transform_0(%arg0: i32, %arg1: i32) -> (i32, i32, i32, i32) {
    %c2_i32 = arith.constant 2 : i32
    %0 = arith.muli %arg0, %c2_i32 : i32
    %1 = arith.addi %0, %arg1 : i32
    %c0_i32 = arith.constant 0 : i32
    %c0_i32_0 = arith.constant 0 : i32
    %c0_i32_1 = arith.constant 0 : i32
    %c0_i32_2 = arith.constant 0 : i32
    return %c0_i32, %c0_i32_0, %1, %c0_i32_1 : i32, i32, i32, i32
  }
  func.func @transform_1(%arg0: i32, %arg1: i32) -> (i32, i32, i32, i32) {
    %c2_i32 = arith.constant 2 : i32
    %0 = arith.muli %arg0, %c2_i32 : i32
    %1 = arith.addi %0, %arg1 : i32
    %c0_i32 = arith.constant 0 : i32
    %c0_i32_0 = arith.constant 0 : i32
    %c0_i32_1 = arith.constant 0 : i32
    %c0_i32_2 = arith.constant 0 : i32
    return %c0_i32, %c0_i32_0, %1, %c0_i32_1 : i32, i32, i32, i32
  }
  func.func @transform_2(%arg0: i32, %arg1: i32) -> (i32, i32, i32) {
    %c0_i32 = arith.constant 0 : i32
    %c0_i32_0 = arith.constant 0 : i32
    %c0_i32_1 = arith.constant 0 : i32
    return %arg0, %c0_i32, %c0_i32_0 : i32, i32, i32
  }
}

</mosaic_0001>

<bundles_post_ra>
// kernel: tpu_custom_call.1
= control target key start
LH: loop header
LB: loop body
LE: loop exit
PB: predicated region body
PF: predicated region fallthrough
CT: control target
= control target key end

     0   :  { %7 = vsyncpa [#allocation4], 0  ;;  %s828_s0 = inlined_call_operand.hbm [shape: f32[2,4,16,128], index: 0, kind: input, shape index: {}]   ;;  %s829_s1 = inlined_call_operand.hbm [shape: f32[2,4,16,128], index: 1, kind: input, shape index: {}]   ;;  %s830_s2 = inlined_call_operand.hbm [shape: f32[1,1,1], index: 2, kind: output, shape index: {}]  }
   0x1   :  { %9 = vsyncpa [#allocation4 + $0x1], 0 }
   0x2   :  { %10 = vsyncpa [#allocation7], 0 }
   0x3   :  { %12 = vsyncpa [#allocation7 + $0x1], 0 }
   0x4   :  { %13 = vsyncpa [#allocation5], 0  ;;  %s680_s9 = smov 0   ;;  %s682_s10 = smov 0  }
   0x5   :  { %s684_s11 = smov 0   ;;  %s686_s12 = smov 0  }
   0x6   :  { %s688_s13 = smov 0   ;;  %s690_s14 = smov 0  }
   0x7 LB: > { %s405_s15 = sadd.s32 4294967295, %s656_s14   ;;  %s28_s16 = sadd.s32 1, %s652_s13  ;;  %s656_s14 = sphi %s690_s14, %s19_s14   ;;  %s652_s13 = sphi %s688_s13, %s840_s13   ;;  %s648_s12 = sphi %s686_s12, %s839_s12   ;;  %s644_s11 = sphi %s684_s11, %s838_s11   ;;  %s640_s10 = sphi %s682_s10, %s837_s10   ;;  %s636_s9 = sphi %s680_s9, %s836_s9  }
   0x8   : > { %p29_p0 = scmp.ge.s32.totalorder %s28_s16, 2  ;;  %s42_s17 = sadd.s32 1, %s644_s11 }
   0x9   : > { %p49_p1 = scmp.ne.s32.totalorder %s644_s11, %s640_s10  ;;  %p50_p2 = scmp.eq.s32.totalorder %s656_s14, 0 }
   0xa   : > { %s842_s16 = smov (%p29_p0, %s28_s16), 0  ;;  %p55_p4 = scmp.ne.s32.totalorder %s640_s10, %s636_s9 }
   0xb   : > { %p716_p3 = por %p50_p2, %p49_p1  ;;  %s39_s19 = ssub.s32 %s652_s13, %s842_s16 }
   0xc   : > { %p56_p5 = scmp.eq.s32.totalorder %s405_s15, 0  ;;  %p40_p6 = scmp.eq.s32.totalorder %s39_s19, 0 }
   0xd   : > { %p438_p8 = scmp.lt.s32.totalorder %s656_s14, 2  ;;  %s734_s22 = sand.u32 1, %s644_s11  }
   0xe   : > { %p725_p7 = por %p56_p5, %p55_p4  ;;  %s409_s23 = sshll.u32 %s652_s13, 7 }
   0xf   : > { %s731_s21 = scalar_select %p40_p6, %s644_s11, %s42_s17  }
  0x10   : > { %s408_s24 = sshll.u32 %s734_s22, 5  ;;  %s146_s27 = scalar_lea.hbm %s828_s0, %s409_s23 }
  0x11   : > { %s139_s28 = scalar_lea.vmem [#allocation3], %s408_s24  ;;  %p747_p9 = pnand %p438_p8, %p716_p3 }
  0x12   : > { %s147_s29 = sshll.u32 %s139_s28, 4  ;;  %p412_p10 = scmp.ge.s32.totalorder %s656_s14, 1  ;;  %s148_s29 = int_to_ptr.vmem [resolvable:$true] %s147_s29 }
  0x13   : > { %s136_s3 = scalar_lea.sflag [#allocation4], %s734_s22  ;;  %p520_p11 = pneg %p747_p9 }
  0x14   : > { %s531_s4 = scalar_lea.vmem %s148_s29, 512  ;;  %s658_s5 = smov [#allocation3]  }
  0x15   : > { %p532_p12 = scmp.ne.s32.totalorder %s148_s29, %s531_s4  ;;  %s536_s6 = sshll.u32 %s658_s5, 4  ;;  %s537_s6 = int_to_ptr.vmem [resolvable:$false] %s536_s6 }
  0x16   : > { %s538_s7 = scalar_lea.vmem %s537_s6, 1024  ;;  %p539_p1 = scmp.lt.s32.totalorder %s148_s29, %s537_s6 }
  0x17   : > { %p534_p13 = pnand %p532_p12, %p520_p11  ;;  %p540_p2 = scmp.lt.s32.totalorder %s538_s7, %s531_s4 }
  0x19   : > { %p535_p0 = pneg %p534_p13  ;;  %p541_p3 = por %p540_p2, %p539_p1 }
  0x1b   : > { %p542_p4 = pnand %p541_p3, %p535_p0 }
  0x1d   : > { %545 = shalt.err (!%p542_p4)
}
  0x1e   : > { %s659_s8 = smov 256   ;;  %s660_s9 = smov 128  }
  0x1f   : > { %s661_s17 = smov 8   ;;  %p177_p5 = scmp.lt.s32.totalorder %s656_s14, 3 }
  0x20   : > { %434 = dma.hbm_to_vmem [thread:$0]  (!%p747_p9), %s146_s27, 512, %s148_s29, %s136_s3, %s659_s8, %s660_s9, %s661_s17  }
  0x21   : > { %s168_s25 = scalar_lea.hbm %s829_s1, %s409_s23  ;;  %p768_p6 = pnand %p412_p10, %p177_p5 }
  0x22   : > { %s161_s28 = scalar_lea.vmem [#allocation6], %s408_s24  ;;  %s158_s5 = scalar_lea.sflag [#allocation7], %s734_s22 }
  0x23   : > { %s169_s4 = sshll.u32 %s161_s28, 4  ;;  %s662_s27 = smov [#allocation6]   ;;  %s170_s4 = int_to_ptr.vmem [resolvable:$true] %s169_s4 }
  0x24   : > { %s559_s6 = scalar_lea.vmem %s170_s4, 512  ;;  %s564_s29 = sshll.u32 %s662_s27, 4  ;;  %s565_s29 = int_to_ptr.vmem [resolvable:$false] %s564_s29 }
  0x25   : > { %p560_p8 = scmp.ne.s32.totalorder %s170_s4, %s559_s6  ;;  %s566_s23 = scalar_lea.vmem %s565_s29, 1024 }
  0x26   : > { %p567_p0 = scmp.lt.s32.totalorder %s170_s4, %s565_s29  ;;  %p568_p10 = scmp.lt.s32.totalorder %s566_s23, %s559_s6 }
  0x27   : > { %p562_p12 = pnand %p560_p8, %p520_p11 }
  0x28   : > { %p569_p1 = por %p568_p10, %p567_p0 }
  0x29   : > { %p563_p13 = pneg %p562_p12 }
  0x2b   : > { %p570_p2 = pnand %p569_p1, %p563_p13 }
  0x2d   : > { %573 = shalt.err (!%p570_p2)
}
  0x2e   : > { %437 = dma.hbm_to_vmem [thread:$0]  (!%p747_p9), %s168_s25, 512, %s170_s4, %s158_s5, %s659_s8, %s660_s9, %s661_s17  }
  0x2f   : > { %181 = sbr.rel (%p768_p6) target bundleno = 368 (0x170), region = 28  ;;  %s183_s22 = sand.u32 (!%p768_p6), 1, %s640_s10  }
  0x30   : > { %s413_s24 = sshll.u32 (!%p768_p6), %s183_s22, 5  ;;  %s184_s3 = scalar_lea.sflag (!%p768_p6), [#allocation4], %s183_s22 }
  0x31   : > { %s187_s7 = scalar_lea.vmem (!%p768_p6), [#allocation3], %s413_s24 }
  0x34   : > { %623 = dma.done.wait (%p725_p7), %s184_s3, 512  }
  0x35   : > { %625 = vsyncadd (%p725_p7), %s184_s3, 4294966784  ;;  %s193_s18 = scalar_lea.sflag [#allocation7], %s183_s22  ;;  %s196_s19 = scalar_lea.vmem [#allocation6], %s413_s24 }
  0x36   : > { %627 = dma.done.wait (%p725_p7), %s193_s18, 512  }
  0x37   : > { %629 = vsyncadd (%p725_p7), %s193_s18, 4294966784  ;;  %p415_p9 = scmp.ne.s32.totalorder %s648_s12, 0 }
  0x39   : > { %224 = sbr.rel (%p415_p9) target bundleno = 64 (0x40), region = 40 }
  0x3e   : > { %v663_v0 = vmov 0.0  }
  0x3f   : > { %225 = vst [vmem:[#allocation2] sm:$0xff] %v663_v0 }
  0x40 PF: > { %v227_v1 = vld [vmem:[%s187_s7] sm:$0xff]  ;;  %v228_v2 = vld [vmem:[%s187_s7 + $0x8] sm:$0xff]  ;;  %v229_v3 = vld [vmem:[%s187_s7 + $0x10] sm:$0xff]  ;;  %p416_p7 = scmp.ne.s32.totalorder %s648_s12, 1 }
  0x41   : > { %v230_v4 = vld [vmem:[%s187_s7 + $0x18] sm:$0xff]  ;;  %v231_v5 = vmax.f32 %v227_v1, %v228_v2  ;;  %v257_v6 = vld [vmem:[%s196_s19] sm:$0xff]  ;;  %v258_v8 = vld [vmem:[%s196_s19 + $0x8] sm:$0xff] }
  0x42   : > { %v232_v7 = vmax.f32 %v229_v3, %v230_v4  ;;  %v259_v9 = vld [vmem:[%s196_s19 + $0x10] sm:$0xff]  ;;  %v260_v10 = vld [vmem:[%s196_s19 + $0x18] sm:$0xff]  ;;  %v261_v11 = vmax.f32 %v257_v6, %v258_v8 }
  0x43   : > { %v262_v12 = vmax.f32 %v259_v9, %v260_v10 }
  0x44   : > { %v233_v13 = vmax.f32 %v231_v5, %v232_v7 }
  0x45   : > { %v263_v14 = vmax.f32 %v261_v11, %v262_v12 }
  0x46   : > { %v234_v15 = vsub.f32 %v227_v1, %v233_v13  ;;  %v235_v16 = vsub.f32 %v228_v2, %v233_v13  ;;  %v236_v17 = vsub.f32 %v229_v3, %v233_v13  ;;  %v237_v18 = vsub.f32 %v230_v4, %v233_v13  ;;  %v226_v59 = vld [vmem:[#allocation2] sm:$0xff] }
  0x47   : > { %v264_v19 = vsub.f32 %v257_v6, %v263_v14  ;;  %v265_v20 = vsub.f32 %v258_v8, %v263_v14  ;;  %v266_v24 = vsub.f32 %v259_v9, %v263_v14  ;;  %v267_v26 = vsub.f32 %v260_v10, %v263_v14 }
  0x48   : > { %v238_v21 = vmul.f32 1.442695, %v234_v15  ;;  %v240_v22 = vmul.f32 1.442695, %v235_v16  ;;  %v242_v23 = vmul.f32 1.442695, %v236_v17 }
  0x49   : > { %v244_v25 = vmul.f32 1.442695, %v237_v18  ;;  %v268_v27 = vmul.f32 1.442695, %v264_v19  ;;  %v270_v28 = vmul.f32 1.442695, %v265_v20 }
  0x4a   : > { %494 = vpow2.f32 %v238_v21  ;;  %v272_v29 = vmul.f32 1.442695, %v266_v24  ;;  %v274_v30 = vmul.f32 1.442695, %v267_v26 }
  0x4b   : > { %496 = vpow2.f32 %v240_v22 }
  0x4c   : > { %498 = vpow2.f32 %v242_v23 }
  0x4d   : > { %500 = vpow2.f32 %v244_v25 }
  0x4e   : > { %502 = vpow2.f32 %v268_v27 }
  0x4f   : > { %504 = vpow2.f32 %v270_v28 }
  0x50   : > { %506 = vpow2.f32 %v272_v29 }
  0x51   : > { %508 = vpow2.f32 %v274_v30 }
  0x57   : > { %v495_v31 = vpop.eup %494 }
  0x58   : > { %v497_v32 = vpop.eup %496 }
  0x59   : > { %v499_v33 = vpop.eup %498  ;;  %v246_v34 = vadd.f32 %v497_v32, %v495_v31 }
  0x5a   : > { %v501_v35 = vpop.eup %500 }
  0x5b   : > { %v503_v36 = vpop.eup %502  ;;  %v247_v37 = vadd.f32 %v499_v33, %v246_v34 }
  0x5c   : > { %v505_v38 = vpop.eup %504 }
  0x5d   : > { %v507_v39 = vpop.eup %506  ;;  %v249_v40 = vadd.f32 %v501_v35, %v247_v37  ;;  %v276_v41 = vadd.f32 %v505_v38, %v503_v36 }
  0x5e   : > { %v509_v42 = vpop.eup %508 }
  0x5f   : > { %v250_v43 = vmul.f32 3.0, %v249_v40  ;;  %v277_v44 = vadd.f32 %v507_v39, %v276_v41 }
  0x61   : > { %510 = vrcp.f32 %v250_v43  ;;  %v279_v45 = vadd.f32 %v509_v42, %v277_v44 }
  0x63   : > { %v280_v46 = vmul.f32 3.0, %v279_v45 }
  0x65   : > { %512 = vrcp.f32 %v280_v46 }
  0x6e   : > { %v511_v47 = vpop.eup %510 }
  0x6f   : > { %v252_v48 = vmul.f32 %v511_v47, %v247_v37 }
  0x71   : > { %v253_v49 = vadd.f32 1e-06, %v252_v48 }
  0x72   : > { %v513_v50 = vpop.eup %512 }
  0x73   : > { %514 = vlog2.f32 %v253_v49  ;;  %v282_v51 = vmul.f32 %v513_v50, %v277_v44 }
  0x75   : > { %v283_v52 = vadd.f32 1e-06, %v282_v51 }
  0x77   : > { %516 = vlog2.f32 %v283_v52 }
  0x80   : > { %v515_v53 = vpop.eup %514 }
  0x81   : > { %v255_v54 = vmul.f32 0.6931472, %v515_v53 }
  0x83   : > { %v256_v56 = vsub.f32 0.0, %v255_v54 }
  0x84   : > { %v517_v55 = vpop.eup %516 }
  0x85   : > { %v285_v57 = vmul.f32 0.6931472, %v517_v55 }
  0x87   : > { %v286_v58 = vsub.f32 0.0, %v285_v57 }
  0x89   : > { %v287_v60 = vadd.f32 %v286_v58, %v256_v56  ;;  %293 = sbr.rel (%p416_p7) target bundleno = 353 (0x161), region = 44 }
  0x8b   : > { %v288_v61 = vadd.f32 %v287_v60, %v226_v59 }
  0x8d   : > { %289 = vst [vmem:[#allocation2] sm:$0xff] %v288_v61 }
  0x8e   : > { %vm306_vm0 = vcmask 0  }
  0x94   : > { %v294_v62 = vld [vmem:[#allocation2] sm:$0xff] }
  0x95   : > { %295 = vadd.xlane.f32.xlu0 %v294_v62 }
 0x11e   : > { %v296_v63 = vpop.xlane.xlu0 %295 }
 0x11f   : > { %v297_v0 = vrot.slane %v296_v63, 4 }
 0x121   : > { %v298_v1 = vadd.f32 %v297_v0, %v296_v63 }
 0x123   : > { %v299_v2 = vrot.slane %v298_v1, 2 }
 0x125   : > { %v300_v3 = vadd.f32 %v299_v2, %v298_v1 }
 0x127   : > { %v301_v4 = vrot.slane %v300_v3, 1 }
 0x129   : > { %v302_v5 = vadd.f32 %v301_v4, %v300_v3 }
 0x12b   : > { %421 = vpush %v302_v5 }
 0x15c   : > { %s422_s20 = spop %421 }
 0x15d   : > { %v304_v6 = vstv %s422_s20 }
 0x15e   : > { %v305_v7 = vmul.f32 0.00048828125, %v304_v6 }
 0x160   : > { %307 = vst.msk [vmem:[#allocation8] sm:$0x1] %vm306_vm0, %v305_v7 }
 0x161 PF: > { %p795_p11 = scmp.eq.s32.totalorder %s405_s15, 1  ;;  %s664_s30 = smov [#allocation8]  }
 0x162   : > { %s317_s8 = sshll.u32 %s664_s30, 4  ;;  %s318_s8 = int_to_ptr.vmem [resolvable:$true] %s317_s8 }
 0x163   : > { %s574_s9 = scalar_lea.vmem %s318_s8, 16  ;;  %s580_s17 = scalar_lea.vmem %s318_s8, 32 }
 0x164   : > { %p575_p3 = scmp.ne.s32.totalorder %s318_s8, %s574_s9  ;;  %p581_p6 = scmp.lt.s32.totalorder %s318_s8, %s318_s8 }
 0x165   : > { %p582_p8 = scmp.lt.s32.totalorder %s580_s17, %s574_s9 }
 0x166   : > { %p576_p4 = pnand %p575_p3, %p795_p11 }
 0x167   : > { %p583_p12 = por %p582_p8, %p581_p6 }
 0x168   : > { %p577_p5 = pneg %p576_p4 }
 0x16a   : > { %p584_p13 = pnand %p583_p12, %p577_p5 }
 0x16c   : > { %587 = shalt.err (!%p584_p13)
}
 0x16d   : > { %428 = dma.vmem_to_hbm [thread:$0]  (%p795_p11), %s318_s8, 16, %s830_s2, [#allocation5]  }
 0x16e   : > { %631 = dma.done.wait (%p795_p11), [#allocation5], 16  }
 0x16f   : > { %633 = vsyncadd (%p795_p11), [#allocation5], 4294967280 }
 0x170 PF: > { %s19_s14 = sadd.s32 1, %s656_s14   ;;  %s836_s9 = smov %s640_s10 }
 0x171   : > { %p16_p0 = scmp.ge.s32.totalorder %s19_s14, 4   ;;  %s837_s10 = smov %s644_s11 }
 0x172   : > { %s838_s11 = smov %s731_s21  ;;  %s839_s12 = smov %s652_s13 }
 0x173   : > { %s840_s13 = smov %s842_s16  ;;  %18 = sbr.rel (!%p16_p0) target bundleno = 7 (0x7), region = 87 }
 0x178   :  { %330 = vsyncpa [#allocation4], 1 }
 0x179   :  { %332 = vsyncpa [#allocation4 + $0x1], 1 }
 0x17a   :  { %333 = vsyncpa [#allocation7], 1 }
 0x17b   :  { %335 = vsyncpa [#allocation7 + $0x1], 1 }
 0x17c   :  { %336 = vsyncpa [#allocation5], 1 }
 0x17d   :  { %338 = vsyncpa [#allocation5 + $0x1], 1 }

</bundles_post_ra>
